<compile_context>
chip_gen: v5e
topology: v5e:2x2
jax: 0.10.0
libtpu: 0.0.40
codegen_flags: <defaults>
</compile_context>

<pallas_src>
import jax
import jax.numpy as jnp
from jax.experimental import pallas as pl
from jax.experimental.pallas import tpu as pltpu


_HIDDEN = 512
_TB_MAX = 512          # batch-tile rows per grid step (>=512 ~ 85% of HBM roofline)


def _round_up(x, m):
    return (x + m - 1) // m * m


def critic_kernel(s_ref, g_ref, w1s_ref, w1g_ref, b1_ref, w2_ref, b2_ref,
                  w3_ref, b3_ref, o_ref):
    # Layer 1 with the concat fused away:
    #   cat([states, goals], -1).flatten() @ w1 == states_flat @ w1_s + goals @ w1_g
    # bf16 MXU matmuls, f32 accumulation, f32 bias + tanh (EUP).
    h1 = jnp.dot(s_ref[...], w1s_ref[...], preferred_element_type=jnp.float32)
    h1 = h1 + jnp.dot(g_ref[...], w1g_ref[...], preferred_element_type=jnp.float32)
    h1 = jnp.tanh(h1 + b1_ref[...])

    # Layer 2: 512x512 bf16 matmul, f32 accumulate, f32 tanh.
    h2 = jnp.tanh(
        jnp.dot(h1.astype(jnp.bfloat16), w2_ref[...],
                preferred_element_type=jnp.float32) + b2_ref[...])

    # Layer 3 (out_features = 1): VPU multiply + lane reduction instead of an
    # N=1 MXU matmul (avoids a lane-padded weight tile and a wasted MXU pass).
    o_ref[...] = jnp.sum(h2 * w3_ref[...], axis=-1, keepdims=True) + b3_ref[...]


def critic_forward(states, goals, packed_params):
    """Mirror of Critic.forward: cat([states, goals.unsqueeze(-1)], -1) -> flatten -> MLP.

    states: (B, n_regions, 2) f32, goals: (B, n_regions) f32 -> (B, 1) f32.
    """
    w1s, w1g, b1, w2, b2, w3_row, b3 = packed_params
    B = states.shape[0]
    n = goals.shape[-1]
    fs, fg = 2 * n, n

    # Flatten + cast matmul inputs to bf16 (halves activation DMA bytes); the
    # concat itself is fused into the kernel via the split w1.
    s_flat = states.reshape(B, fs).astype(jnp.bfloat16)
    g = goals.astype(jnp.bfloat16)

    # Batch tiling: pad B so every block is full. TB is either the (8-rounded)
    # full batch or 512, so block shapes are always layout-legal.
    TB = min(_TB_MAX, _round_up(B, 8))
    B_pad = _round_up(B, TB)
    if B_pad != B:
        s_flat = jnp.pad(s_flat, ((0, B_pad - B), (0, 0)))
        g = jnp.pad(g, ((0, B_pad - B), (0, 0)))
    grid = (B_pad // TB,)

    def act_spec(cols):
        return pl.BlockSpec((TB, cols), lambda i: (i, 0))

    def resident(arr):
        # Constant index_map: DMA'd once, stays resident in VMEM across grid steps.
        return pl.BlockSpec(arr.shape, lambda i: (0, 0))

    flops = 2 * B_pad * (3 * n * _HIDDEN + _HIDDEN * _HIDDEN + _HIDDEN)
    bytes_accessed = (
        2 * (w1s.size + w1g.size + w2.size)                       # bf16 weights
        + 4 * (b1.size + b2.size + w3_row.size + b3.size)         # f32 small params
        + 2 * B_pad * (fs + fg)                                   # bf16 activations in
        + 4 * B_pad)                                              # f32 output

    out = pl.pallas_call(
        critic_kernel,
        out_shape=jax.ShapeDtypeStruct((B_pad, 1), jnp.float32),
        grid=grid,
        in_specs=[
            act_spec(fs),                       # states_flat tile
            act_spec(fg),                       # goals tile
            resident(w1s), resident(w1g), resident(b1),
            resident(w2), resident(b2),
            resident(w3_row), resident(b3),
        ],
        out_specs=pl.BlockSpec((TB, 1), lambda i: (i, 0)),
        compiler_params=pltpu.CompilerParams(
            dimension_semantics=("parallel",),          # megacore sharding on v7x
            vmem_limit_bytes=32 * 1024 * 1024,          # explicit; fits v5e/v6e/v7x
        ),
        cost_estimate=pl.CostEstimate(
            flops=flops,
            transcendentals=2 * B_pad * _HIDDEN,        # two tanh(512) layers
            bytes_accessed=bytes_accessed,
        ),
    )(s_flat, g, w1s, w1g, b1, w2, b2, w3_row, b3)

    return out[:B]


def init_params(key, n_regions):
    """f32 parameters with the nn.Linear shapes/init of Critic.__init__."""
    f_in = 3 * n_regions
    k1, k2, k3 = jax.random.split(key, 3)

    def linear(k, fan_in, fan_out):
        bound = 1.0 / jnp.sqrt(jnp.float32(fan_in))
        kw, kb = jax.random.split(k)
        w = jax.random.uniform(kw, (fan_in, fan_out), jnp.float32, -bound, bound)
        b = jax.random.uniform(kb, (1, fan_out), jnp.float32, -bound, bound)
        return w, b

    w1, b1 = linear(k1, f_in, _HIDDEN)
    w2, b2 = linear(k2, _HIDDEN, _HIDDEN)
    w3, b3 = linear(k3, _HIDDEN, 1)
    return (w1, b1, w2, b2, w3, b3)


def pack_params(params, n_regions):
    """Split/permute/cast canonical f32 params into the kernel layout.

    w1's rows are reordered so that
        cat([states, goals[..., None]], -1).reshape(B, -1) @ w1
          == states.reshape(B, -1) @ w1_s + goals @ w1_g,
    letting the kernel skip the concat entirely.
    """
    w1, b1, w2, b2, w3, b3 = params
    f_in = 3 * n_regions
    state_rows = jnp.array([i for i in range(f_in) if i % 3 != 2], dtype=jnp.int32)
    goal_rows = jnp.array([i for i in range(f_in) if i % 3 == 2], dtype=jnp.int32)
    w1s = w1[state_rows].astype(jnp.bfloat16)       # (2*n_regions, 512)
    w1g = w1[goal_rows].astype(jnp.bfloat16)        # (n_regions, 512)
    w2b = w2.astype(jnp.bfloat16)                   # (512, 512)
    w3_row = w3.T.astype(jnp.float32)               # (1, 512) for the VPU layer-3
    # TODO(synk): optional int8 (v5e/v6e) / fp8 (v7x) quantization of w2 is
    # generation-specific and left out; bf16 is the portable choice.
    return (w1s, w1g, b1, w2b, b2, w3_row, b3)


if __name__ == "__main__":
    n_regions = 8
    batch = 2

    key = jax.random.PRNGKey(0)
    kp, ks, kg = jax.random.split(key, 3)

    params = init_params(kp, n_regions)
    packed = pack_params(params, n_regions)
    states = jax.random.normal(ks, (batch, n_regions, 2), jnp.float32)
    goals = jax.random.normal(kg, (batch, n_regions), jnp.float32)

    out = critic_forward(states, goals, packed)
    out = jax.block_until_ready(out)
    assert out.shape == (batch, 1)

    # Reference 1: original PyTorch-semantics forward in full f32 (loose tol, bf16 weights).
    w1, b1, w2, b2, w3, b3 = params
    x = jnp.concatenate([states, goals[..., None]], axis=-1).reshape(batch, -1)
    ref32 = jnp.tanh(x @ w1 + b1)
    ref32 = jnp.tanh(ref32 @ w2 + b2)
    ref32 = ref32 @ w3 + b3
    assert jnp.allclose(out, ref32, atol=5e-2, rtol=5e-2)

    # Reference 2: bf16-faithful emulation of the kernel math (tight tol).
    w1s, w1g, b1p, w2b, b2p, w3_row, b3p = packed
    sflat = states.reshape(batch, -1).astype(jnp.bfloat16)
    gb = goals.astype(jnp.bfloat16)
    h1 = jnp.tanh(
        jnp.dot(sflat, w1s, preferred_element_type=jnp.float32)
        + jnp.dot(gb, w1g, preferred_element_type=jnp.float32) + b1p)
    h2 = jnp.tanh(
        jnp.dot(h1.astype(jnp.bfloat16), w2b, preferred_element_type=jnp.float32) + b2p)
    refbf = jnp.sum(h2 * w3_row, axis=-1, keepdims=True) + b3p
    assert jnp.allclose(out, refbf, atol=1e-3, rtol=1e-3)

    print("KERNEL_OK")
</pallas_src>

<mosaic_0001>
module attributes {stable_mosaic.version = 11 : i64} {
  func.func @critic_kernel(%arg0: i32, %arg1: memref<8x16xbf16, #tpu.memory_space<vmem>>, %arg2: memref<8x8xbf16, #tpu.memory_space<vmem>>, %arg3: memref<16x512xbf16, #tpu.memory_space<vmem>>, %arg4: memref<8x512xbf16, #tpu.memory_space<vmem>>, %arg5: memref<1x512xf32, #tpu.memory_space<vmem>>, %arg6: memref<512x512xbf16, #tpu.memory_space<vmem>>, %arg7: memref<1x512xf32, #tpu.memory_space<vmem>>, %arg8: memref<1x512xf32, #tpu.memory_space<vmem>>, %arg9: memref<1x1xf32, #tpu.memory_space<vmem>>, %arg10: memref<8x1xf32, #tpu.memory_space<vmem>>) attributes {dimension_semantics = [#tpu.dimension_semantics<parallel>], iteration_bounds = array<i64: 1>, scalar_prefetch = 0 : i64, scratch_operands = 0 : i64, tpu.core_type = #tpu.core_type<tc>, window_params = [{transform_indices = @transform_0, window_bounds = array<i64: 8, 16>}, {transform_indices = @transform_1, window_bounds = array<i64: 8, 8>}, {pipeline_mode = #tpu.pipeline_mode<synchronous>, transform_indices = @transform_2, window_bounds = array<i64: 16, 512>}, {pipeline_mode = #tpu.pipeline_mode<synchronous>, transform_indices = @transform_3, window_bounds = array<i64: 8, 512>}, {pipeline_mode = #tpu.pipeline_mode<synchronous>, transform_indices = @transform_4, window_bounds = array<i64: 1, 512>}, {pipeline_mode = #tpu.pipeline_mode<synchronous>, transform_indices = @transform_5, window_bounds = array<i64: 512, 512>}, {pipeline_mode = #tpu.pipeline_mode<synchronous>, transform_indices = @transform_6, window_bounds = array<i64: 1, 512>}, {pipeline_mode = #tpu.pipeline_mode<synchronous>, transform_indices = @transform_7, window_bounds = array<i64: 1, 512>}, {pipeline_mode = #tpu.pipeline_mode<synchronous>, transform_indices = @transform_8, window_bounds = array<i64: 1, 1>}, {transform_indices = @transform_9, window_bounds = array<i64: 8, 1>}]} {
    %c0 = arith.constant 0 : index
    %c0_0 = arith.constant 0 : index
    %0 = vector.load %arg1[%c0, %c0_0] : memref<8x16xbf16, #tpu.memory_space<vmem>>, vector<8x16xbf16>
    %c0_1 = arith.constant 0 : index
    %c0_2 = arith.constant 0 : index
    %1 = vector.load %arg3[%c0_1, %c0_2] : memref<16x512xbf16, #tpu.memory_space<vmem>>, vector<16x512xbf16>
    %cst = arith.constant dense<0.000000e+00> : vector<8x512xf32>
    %2 = tpu.matmul %0, %1, %cst {dimension_numbers = #tpu.dot_dimension_numbers<[1], [0], [0], [1], [0, 0, 1, 1], [], []>} : vector<8x16xbf16>, vector<16x512xbf16>, vector<8x512xf32> -> vector<8x512xf32>
    %c0_3 = arith.constant 0 : index
    %c0_4 = arith.constant 0 : index
    %3 = vector.load %arg2[%c0_3, %c0_4] : memref<8x8xbf16, #tpu.memory_space<vmem>>, vector<8x8xbf16>
    %c0_5 = arith.constant 0 : index
    %c0_6 = arith.constant 0 : index
    %4 = vector.load %arg4[%c0_5, %c0_6] : memref<8x512xbf16, #tpu.memory_space<vmem>>, vector<8x512xbf16>
    %cst_7 = arith.constant dense<0.000000e+00> : vector<8x512xf32>
    %5 = tpu.matmul %3, %4, %cst_7 {dimension_numbers = #tpu.dot_dimension_numbers<[1], [0], [0], [1], [0, 0, 1, 1], [], []>} : vector<8x8xbf16>, vector<8x512xbf16>, vector<8x512xf32> -> vector<8x512xf32>
    %6 = arith.addf %2, %5 : vector<8x512xf32>
    %c0_8 = arith.constant 0 : index
    %c0_9 = arith.constant 0 : index
    %7 = vector.load %arg5[%c0_8, %c0_9] : memref<1x512xf32, #tpu.memory_space<vmem>>, vector<1x512xf32>
    %8 = vector.broadcast %7 : vector<1x512xf32> to vector<8x512xf32>
    %9 = arith.addf %6, %8 : vector<8x512xf32>
    %10 = math.tanh %9 : vector<8x512xf32>
    %11 = arith.truncf %10 : vector<8x512xf32> to vector<8x512xbf16>
    %c0_10 = arith.constant 0 : index
    %c0_11 = arith.constant 0 : index
    %12 = vector.load %arg6[%c0_10, %c0_11] : memref<512x512xbf16, #tpu.memory_space<vmem>>, vector<512x512xbf16>
    %cst_12 = arith.constant dense<0.000000e+00> : vector<8x512xf32>
    %13 = tpu.matmul %11, %12, %cst_12 {dimension_numbers = #tpu.dot_dimension_numbers<[1], [0], [0], [1], [0, 0, 1, 1], [], []>} : vector<8x512xbf16>, vector<512x512xbf16>, vector<8x512xf32> -> vector<8x512xf32>
    %c0_13 = arith.constant 0 : index
    %c0_14 = arith.constant 0 : index
    %14 = vector.load %arg7[%c0_13, %c0_14] : memref<1x512xf32, #tpu.memory_space<vmem>>, vector<1x512xf32>
    %15 = vector.broadcast %14 : vector<1x512xf32> to vector<8x512xf32>
    %16 = arith.addf %13, %15 : vector<8x512xf32>
    %17 = math.tanh %16 : vector<8x512xf32>
    %c0_15 = arith.constant 0 : index
    %c0_16 = arith.constant 0 : index
    %18 = vector.load %arg8[%c0_15, %c0_16] : memref<1x512xf32, #tpu.memory_space<vmem>>, vector<1x512xf32>
    %19 = vector.broadcast %18 : vector<1x512xf32> to vector<8x512xf32>
    %20 = arith.mulf %17, %19 : vector<8x512xf32>
    %cst_17 = arith.constant dense<0.000000e+00> : vector<8xf32>
    %21 = vector.multi_reduction <add>, %20, %cst_17 [1] : vector<8x512xf32> to vector<8xf32>
    %22 = vector.shape_cast %21 : vector<8xf32> to vector<8x1xf32>
    %c0_18 = arith.constant 0 : index
    %c0_19 = arith.constant 0 : index
    %23 = vector.load %arg9[%c0_18, %c0_19] : memref<1x1xf32, #tpu.memory_space<vmem>>, vector<1x1xf32>
    %24 = vector.broadcast %23 : vector<1x1xf32> to vector<8x1xf32>
    %25 = arith.addf %22, %24 : vector<8x1xf32>
    %c0_20 = arith.constant 0 : index
    %c0_21 = arith.constant 0 : index
    %26 = vector.load %arg10[%c0_20, %c0_21] : memref<8x1xf32, #tpu.memory_space<vmem>>, vector<8x1xf32>
    tpu.vector_store %arg10[%c0_20, %c0_21], %25 {strides = array<i32>} : memref<8x1xf32, #tpu.memory_space<vmem>>, vector<8x1xf32>,
    return
  }
  func.func @transform_0(%arg0: i32) -> (i32, i32) {
    %c0_i32 = arith.constant 0 : i32
    %c0_i32_0 = arith.constant 0 : i32
    return %arg0, %c0_i32 : i32, i32
  }
  func.func @transform_1(%arg0: i32) -> (i32, i32) {
    %c0_i32 = arith.constant 0 : i32
    %c0_i32_0 = arith.constant 0 : i32
    return %arg0, %c0_i32 : i32, i32
  }
  func.func @transform_2(%arg0: i32) -> (i32, i32) {
    %c0_i32 = arith.constant 0 : i32
    %c0_i32_0 = arith.constant 0 : i32
    %c0_i32_1 = arith.constant 0 : i32
    return %c0_i32, %c0_i32_0 : i32, i32
  }
  func.func @transform_3(%arg0: i32) -> (i32, i32) {
    %c0_i32 = arith.constant 0 : i32
    %c0_i32_0 = arith.constant 0 : i32
    %c0_i32_1 = arith.constant 0 : i32
    return %c0_i32, %c0_i32_0 : i32, i32
  }
  func.func @transform_4(%arg0: i32) -> (i32, i32) {
    %c0_i32 = arith.constant 0 : i32
    %c0_i32_0 = arith.constant 0 : i32
    %c0_i32_1 = arith.constant 0 : i32
    return %c0_i32, %c0_i32_0 : i32, i32
  }
  func.func @transform_5(%arg0: i32) -> (i32, i32) {
    %c0_i32 = arith.constant 0 : i32
    %c0_i32_0 = arith.constant 0 : i32
    %c0_i32_1 = arith.constant 0 : i32
    return %c0_i32, %c0_i32_0 : i32, i32
  }
  func.func @transform_6(%arg0: i32) -> (i32, i32) {
    %c0_i32 = arith.constant 0 : i32
    %c0_i32_0 = arith.constant 0 : i32
    %c0_i32_1 = arith.constant 0 : i32
    return %c0_i32, %c0_i32_0 : i32, i32
  }
  func.func @transform_7(%arg0: i32) -> (i32, i32) {
    %c0_i32 = arith.constant 0 : i32
    %c0_i32_0 = arith.constant 0 : i32
    %c0_i32_1 = arith.constant 0 : i32
    return %c0_i32, %c0_i32_0 : i32, i32
  }
  func.func @transform_8(%arg0: i32) -> (i32, i32) {
    %c0_i32 = arith.constant 0 : i32
    %c0_i32_0 = arith.constant 0 : i32
    %c0_i32_1 = arith.constant 0 : i32
    return %c0_i32, %c0_i32_0 : i32, i32
  }
  func.func @transform_9(%arg0: i32) -> (i32, i32) {
    %c0_i32 = arith.constant 0 : i32
    %c0_i32_0 = arith.constant 0 : i32
    return %arg0, %c0_i32 : i32, i32
  }
}

</mosaic_0001>

<bundles_post_ra>
// kernel: tpu_custom_call.1
= control target key start
LH: loop header
LB: loop body
LE: loop exit
PB: predicated region body
PF: predicated region fallthrough
CT: control target
= control target key end

     0   :  { %s2299_s0 = inlined_call_operand.hbm [shape: bf16[8,16], index: 0, kind: input, shape index: {}]   ;;  %s2300_s1 = inlined_call_operand.hbm [shape: bf16[8,8], index: 1, kind: input, shape index: {}]   ;;  %s2301_s2 = inlined_call_operand.hbm [shape: bf16[16,512], index: 2, kind: input, shape index: {}]   ;;  %s2302_s3 = inlined_call_operand.hbm [shape: bf16[8,512], index: 3, kind: input, shape index: {}]   ;;  %s2303_s4 = inlined_call_operand.vmem [shape: f32[1,512], index: 4, kind: input, shape index: {}]   ;;  %s2304_s5 = inlined_call_operand.hbm [shape: bf16[512,512], index: 5, kind: input, shape index: {}]   ;;  %s2305_s6 = inlined_call_operand.hbm [shape: f32[1,512], index: 6, kind: input, shape index: {}]   ;;  %s2306_s7 = inlined_call_operand.vmem [shape: f32[1,512], index: 7, kind: input, shape index: {}]   ;;  %s2307_s8 = inlined_call_operand.<no memory space> [shape: f32[1,1], index: 8, kind: input, shape index: {}]   ;;  %s2308_s9 = inlined_call_operand.vmem [shape: f32[8,1], index: 9, kind: output, shape index: {}]  }
   0x1   :  { %v14_v0 = vstv %s2307_s8 }
   0x2   :  { %15 = vst [vmem:[#allocation2] sm:$0x1] %v14_v0 }
   0x3   :  { %16 = vsyncpa [#allocation4], 0 }
   0x4   :  { %17 = vsyncpa [#allocation6], 0 }
   0x5   :  { %18 = vsyncpa [#allocation9], 0  ;;  %s36_s13 = sshll.u32 %s2300_s1, 4  ;;  %s37_s13 = int_to_ptr.hbm [resolvable:$true] %s36_s13 }
   0x6   :  { %19 = vsyncpa [#allocation12], 0  ;;  %s2175_s14 = smov [#allocation5]   ;;  %s60_s18 = sshll.u32 %s2302_s3, 4  ;;  %s61_s18 = int_to_ptr.hbm [resolvable:$true] %s60_s18 }
   0x7   :  { %s38_s15 = sshll.u32 %s2175_s14, 4  ;;  %s2176_s8 = smov [#allocation8]   ;;  %s39_s15 = int_to_ptr.vmem [resolvable:$true] %s38_s15 }
   0x8   :  { %41 = dma.hbm_to_vmem [thread:$0]  %s37_s13, 64, %s39_s15, [#allocation6]  }
   0x9   :  { %s62_s19 = sshll.u32 %s2176_s8, 4  ;;  %s25_s22 = sshll.u32 %s2299_s0, 4  ;;  %s63_s19 = int_to_ptr.vmem [resolvable:$true] %s62_s19  ;;  %s26_s22 = int_to_ptr.hbm [resolvable:$true] %s25_s22 }
   0xa   :  { %65 = dma.hbm_to_vmem [thread:$0]  %s61_s18, 256, %s63_s19, [#allocation9]  }
   0xb   :  { %s46_s24 = sshll.u32 %s2301_s2, 4  ;;  %s2177_s25 = smov [#allocation3]   ;;  %s47_s24 = int_to_ptr.hbm [resolvable:$true] %s46_s24 }
   0xc   :  { %s27_s26 = sshll.u32 %s2177_s25, 4  ;;  %s2178_s3 = smov [#allocation7]   ;;  %s28_s26 = int_to_ptr.vmem [resolvable:$true] %s27_s26 }
   0xd   :  { %30 = dma.hbm_to_vmem [thread:$0]  %s26_s22, 64, %s28_s26, [#allocation4]  }
   0xe   :  { %s48_s27 = sshll.u32 %s2178_s3, 4  ;;  %s2179_s28 = smov 256   ;;  %s49_s27 = int_to_ptr.vmem [resolvable:$true] %s48_s27 }
   0xf   :  { %s2180_s29 = smov 16   ;;  %s72_s10 = sshll.u32 %s2304_s5, 4  ;;  %s73_s10 = int_to_ptr.hbm [resolvable:$true] %s72_s10 }
  0x10   :  { %54 = dma.hbm_to_vmem [thread:$0]  %s47_s24, 512, %s49_s27, [#allocation6], %s2179_s28, %s2179_s28, %s2180_s29  }
  0x11   :  { %s2181_s11 = smov [#allocation10]   ;;  %s86_s14 = sshll.u32 %s2305_s6, 4  ;;  %s87_s14 = int_to_ptr.hbm [resolvable:$true] %s86_s14 }
  0x12   :  { %s74_s12 = sshll.u32 %s2181_s11, 4  ;;  %s2182_s15 = smov [#allocation11]   ;;  %s75_s12 = int_to_ptr.vmem [resolvable:$true] %s74_s12 }
  0x13   :  { %80 = dma.hbm_to_vmem [thread:$0]  %s73_s10, 16384, %s75_s12, [#allocation9], %s2179_s28, %s2179_s28, %s2180_s29  }
  0x14   :  { %s88_s16 = sshll.u32 %s2182_s15, 4  ;;  %s89_s16 = int_to_ptr.vmem [resolvable:$true] %s88_s16 }
  0x15   :  { %91 = dma.hbm_to_vmem [thread:$0]  %s87_s14, 64, %s89_s16, [#allocation12]  }
  0x16   :  { %2167 = dma.done.wait [#allocation4], 64  }
  0x17   :  { %2168 = vsyncadd [#allocation4], 4294967232 }
  0x18   :  { %2169 = dma.done.wait [#allocation6], 576  }
  0x19   :  { %2170 = vsyncadd [#allocation6], 4294966720 }
  0x1a   :  { %2171 = dma.done.wait [#allocation9], 16640  }
  0x1b   :  { %2172 = vsyncadd [#allocation9], 4294950656 }
  0x1c   :  { %2173 = dma.done.wait [#allocation12], 64  }
  0x1d   :  { %2174 = vsyncadd [#allocation12], 4294967232  ;;  %v127_v1 = vld [vmem:[#allocation8] sm:$0xff]  ;;  %v128_v2 = vld [vmem:[#allocation8 + $0x8] sm:$0xff]  ;;  %vm143_vm0 = vcmask 1043456   ;;  %vm139_vm1 = vcmask 64512  }
  0x1e   :  { %v131_v3 = vunpack.c.l.b16 %v127_v1  ;;  %v132_v4 = vunpack.c.h.b16 %v127_v1  ;;  %v133_v5 = vunpack.c.l.b16 %v128_v2  ;;  %v134_v6 = vunpack.c.h.b16 %v128_v2  ;;  %v1344_v7 = vld [vmem:[#allocation7 + $0x8] sm:$0xf]  ;;  %v1869_v8 = vld [vmem:[#allocation7 + $0x14] sm:$0xf0]  ;;  %v1336_v9 = vld [vmem:[#allocation7] sm:$0xf] }
  0x1f   :  { %v1868_v10 = vld [vmem:[#allocation7 + $0xc] sm:$0xf0]  ;;  %v1866_v11 = vld [vmem:[#allocation7 + $0x4] sm:$0xf]  ;;  %v1338_v16 = vld [vmem:[#allocation7 + $0x10] sm:$0xf0]  ;;  %v1345_v19 = vor.u32 %v1869_v8, %v1344_v7 }
  0x20   :  { %v135_v12 = vpack.c.b16 %v131_v3, %v131_v3  ;;  %v136_v13 = vpack.c.b16 %v132_v4, %v132_v4  ;;  %v137_v14 = vpack.c.b16 %v133_v5, %v133_v5  ;;  %v138_v15 = vpack.c.b16 %v134_v6, %v134_v6  ;;  %v1867_v17 = vld [vmem:[#allocation7 + $0xc] sm:$0xf]  ;;  %v1346_v18 = vld [vmem:[#allocation7 + $0x18] sm:$0xf0]  ;;  %v1468_v21 = vld [vmem:[#allocation10 + $0xe0] sm:$0xf] }
  0x21   :  { %v1337_v20 = vor.u32 %v1868_v10, %v1336_v9  ;;  %v1900_v22 = vld [vmem:[#allocation10 + $0xec] sm:$0xf0]  ;;  %v1596_v23 = vld [vmem:[#allocation10 + $0x1e0] sm:$0xf]  ;;  %v126_v29 = vld [vmem:[#allocation5] sm:$0xf]  ;;  %v1341_v30 = vor.u32 %v1866_v11, %v1338_v16  ;;  %v1349_v31 = vor.u32 %v1867_v17, %v1346_v18 }
  0x22   :  { %v145_v24 = vsel %vm143_vm0, %v135_v12, 0  ;;  %v148_v25 = vsel %vm143_vm0, %v136_v13, 0  ;;  %v151_v26 = vsel %vm143_vm0, %v137_v14, 0  ;;  %v154_v27 = vsel %vm143_vm0, %v138_v15, 0  ;;  %v1932_v28 = vld [vmem:[#allocation10 + $0x1ec] sm:$0xf0] }
  0x23   :  { %163 = vmatpush.bf16.msra.mxu0 %v145_v24  ;;  %176 = vmatpush.bf16.msra.mxu1 %v148_v25  ;;  %v1724_v32 = vld [vmem:[#allocation10 + $0x2e0] sm:$0xf]  ;;  %v1964_v33 = vld [vmem:[#allocation10 + $0x2ec] sm:$0xf0]  ;;  %v1469_v34 = vor.u32 %v1900_v22, %v1468_v21  ;;  %v1597_v35 = vor.u32 %v1932_v28, %v1596_v23  ;;  %v121_v14 = vld [vmem:[#allocation3] sm:$0xf] }
  0x24   :  { %189 = vmatpush.bf16.msra.mxu2 %v151_v26  ;;  %202 = vmatpush.bf16.msra.mxu3 %v154_v27  ;;  %v1452_v36 = vld [vmem:[#allocation10 + $0xc0] sm:$0xf]  ;;  %v1996_v38 = vld [vmem:[#allocation10 + $0x3ec] sm:$0xf0]  ;;  %v1725_v42 = vor.u32 %v1964_v33, %v1724_v32  ;;  %vm228_vm2 = vcmask 130048   ;;  %vm1320_vm3 = vcmask 7168  }
  0x25   :  { %v1852_v37 = vld [vmem:[#allocation10 + $0x3e0] sm:$0xf]  ;;  %v1896_v39 = vld [vmem:[#allocation10 + $0xcc] sm:$0xf0] }
  0x26   :  { %1330 = vmatmul.msk.bf16.vlgmr.msra.gmra.mxu0 %vm139_vm1, %v126_v29  ;;  %1331 = vmatmul.msk.bf16.vlgmr.msra.gmra.mxu1 %vm139_vm1, %v126_v29  ;;  %v1580_v40 = vld [vmem:[#allocation10 + $0x1c0] sm:$0xf]  ;;  %v1928_v41 = vld [vmem:[#allocation10 + $0x1cc] sm:$0xf0]  ;;  %v1853_v43 = vor.u32 %v1996_v38, %v1852_v37  ;;  %v1453_v48 = vor.u32 %v1896_v39, %v1452_v36 }
  0x27   :  { %239 = vmatpush.bf16.msrb.mxu0 %v1337_v20  ;;  %1332 = vmatmul.msk.bf16.vlgmr.msra.gmra.mxu2 %vm139_vm1, %v126_v29  ;;  %v1708_v44 = vld [vmem:[#allocation10 + $0x2c0] sm:$0xf]  ;;  %v1960_v45 = vld [vmem:[#allocation10 + $0x2cc] sm:$0xf0]  ;;  %v1581_v49 = vor.u32 %v1928_v41, %v1580_v40 }
  0x28   :  { %265 = vmatpush.bf16.msrb.mxu2 %v1345_v19  ;;  %1333 = vmatmul.msk.bf16.vlgmr.msra.gmra.mxu3 %vm139_vm1, %v126_v29  ;;  %v1836_v46 = vld [vmem:[#allocation10 + $0x3c0] sm:$0xf]  ;;  %v1992_v47 = vld [vmem:[#allocation10 + $0x3cc] sm:$0xf0]  ;;  %v1709_v54 = vor.u32 %v1960_v45, %v1708_v44 }
  0x29   :  { %252 = vmatpush.bf16.msrb.mxu1 %v1341_v30  ;;  %278 = vmatpush.bf16.msrb.mxu3 %v1349_v31  ;;  %v1436_v50 = vld [vmem:[#allocation10 + $0xa0] sm:$0xf]  ;;  %v1892_v51 = vld [vmem:[#allocation10 + $0xac] sm:$0xf0]  ;;  %v1837_v55 = vor.u32 %v1992_v47, %v1836_v46 }
  0x2a   :  { %v1564_v52 = vld [vmem:[#allocation10 + $0x1a0] sm:$0xf]  ;;  %v1924_v53 = vld [vmem:[#allocation10 + $0x1ac] sm:$0xf0]  ;;  %v1437_v60 = vor.u32 %v1892_v51, %v1436_v50 }
  0x2b   :  { %1084 = vmatpush.bf16.msra.mxu0 %v1469_v34  ;;  %v1692_v56 = vld [vmem:[#allocation10 + $0x2a0] sm:$0xf]  ;;  %v1956_v57 = vld [vmem:[#allocation10 + $0x2ac] sm:$0xf0]  ;;  %v1565_v61 = vor.u32 %v1924_v53, %v1564_v52  ;;  %v1930_v52 = vld [vmem:[#allocation10 + $0x1e4] sm:$0xf] }
  0x2c   :  { %1110 = vmatpush.bf16.msra.mxu2 %v1725_v42  ;;  %v1820_v58 = vld [vmem:[#allocation10 + $0x3a0] sm:$0xf]  ;;  %v1988_v59 = vld [vmem:[#allocation10 + $0x3ac] sm:$0xf0]  ;;  %v1693_v2 = vor.u32 %v1956_v57, %v1692_v56  ;;  %v1598_v53 = vld [vmem:[#allocation10 + $0x1f0] sm:$0xf0] }
  0x2d   :  { %1097 = vmatpush.bf16.msra.mxu1 %v1597_v35  ;;  %1123 = vmatpush.bf16.msra.mxu3 %v1853_v43  ;;  %v1420_v62 = vld [vmem:[#allocation10 + $0x80] sm:$0xf]  ;;  %v1888_v63 = vld [vmem:[#allocation10 + $0x8c] sm:$0xf0]  ;;  %v1821_v3 = vor.u32 %v1988_v59, %v1820_v58 }
  0x2e   :  { %v1548_v0 = vld [vmem:[#allocation10 + $0x180] sm:$0xf]  ;;  %v1920_v1 = vld [vmem:[#allocation10 + $0x18c] sm:$0xf0]  ;;  %v1421_v6 = vor.u32 %v1888_v63, %v1420_v62  ;;  %v1454_v62 = vld [vmem:[#allocation10 + $0xd0] sm:$0xf0] }
  0x2f   :  { %1085 = vmatpush.bf16.msra.mxu0 %v1453_v48  ;;  %v1404_v4 = vld [vmem:[#allocation10 + $0x60] sm:$0xf]  ;;  %v1549_v7 = vor.u32 %v1920_v1, %v1548_v0  ;;  %v1952_v8 = vld [vmem:[#allocation10 + $0x28c] sm:$0xf0]  ;;  %v1898_v48 = vld [vmem:[#allocation10 + $0xe4] sm:$0xf] }
  0x30   :  { %1111 = vmatpush.bf16.msra.mxu2 %v1709_v54  ;;  %v1676_v5 = vld [vmem:[#allocation10 + $0x280] sm:$0xf]  ;;  %v1984_v10 = vld [vmem:[#allocation10 + $0x38c] sm:$0xf0]  ;;  %v1926_v63 = vld [vmem:[#allocation10 + $0x1c4] sm:$0xf] }
  0x31   :  { %1098 = vmatpush.bf16.msra.mxu1 %v1581_v49  ;;  %1124 = vmatpush.bf16.msra.mxu3 %v1837_v55  ;;  %v1804_v9 = vld [vmem:[#allocation10 + $0x380] sm:$0xf]  ;;  %v1884_v11 = vld [vmem:[#allocation10 + $0x6c] sm:$0xf0]  ;;  %v1677_v15 = vor.u32 %v1952_v8, %v1676_v5  ;;  %v1470_v49 = vld [vmem:[#allocation10 + $0xf0] sm:$0xf0]  ;;  %v1601_v55 = vor.u32 %v1930_v52, %v1598_v53 }
  0x32   :  { %v1532_v12 = vld [vmem:[#allocation10 + $0x160] sm:$0xf]  ;;  %v1916_v13 = vld [vmem:[#allocation10 + $0x16c] sm:$0xf0]  ;;  %v1805_v16 = vor.u32 %v1984_v10, %v1804_v9  ;;  %v1405_v19 = vor.u32 %v1884_v11, %v1404_v4  ;;  %v1473_v51 = vor.u32 %v1898_v48, %v1470_v49  ;;  %v1582_v1 = vld [vmem:[#allocation10 + $0x1d0] sm:$0xf0] }
  0x33   :  { %1086 = vmatpush.bf16.msra.mxu0 %v1437_v60  ;;  %v1388_v17 = vld [vmem:[#allocation10 + $0x40] sm:$0xf]  ;;  %v1533_v20 = vor.u32 %v1916_v13, %v1532_v12  ;;  %v1948_v21 = vld [vmem:[#allocation10 + $0x26c] sm:$0xf0]  ;;  %v1962_v8 = vld [vmem:[#allocation10 + $0x2e4] sm:$0xf] }
  0x34   :  { %1112 = vmatpush.bf16.msra.mxu2 %v1693_v2  ;;  %v1660_v18 = vld [vmem:[#allocation10 + $0x260] sm:$0xf]  ;;  %v1980_v23 = vld [vmem:[#allocation10 + $0x36c] sm:$0xf0]  ;;  %v1585_v2 = vor.u32 %v1926_v63, %v1582_v1  ;;  %v1726_v9 = vld [vmem:[#allocation10 + $0x2f0] sm:$0xf0] }
  0x35   :  { %1099 = vmatpush.bf16.msra.mxu1 %v1565_v61  ;;  %1125 = vmatpush.bf16.msra.mxu3 %v1821_v3  ;;  %v1788_v22 = vld [vmem:[#allocation10 + $0x360] sm:$0xf]  ;;  %v1880_v24 = vld [vmem:[#allocation10 + $0x4c] sm:$0xf0]  ;;  %v1661_v27 = vor.u32 %v1948_v21, %v1660_v18  ;;  %v1894_v61 = vld [vmem:[#allocation10 + $0xc4] sm:$0xf]  ;;  %v1729_v11 = vor.u32 %v1962_v8, %v1726_v9 }
  0x36   :  { %1350 = vmatmul.msk.bf16.vlgmr.msrb.gmra.mxu0 %vm228_vm2, %v121_v14  ;;  %1351 = vmatmul.msk.bf16.vlgmr.msrb.gmra.mxu1 %vm228_vm2, %v121_v14  ;;  %v1516_v25 = vld [vmem:[#allocation10 + $0x140] sm:$0xf]  ;;  %v1912_v26 = vld [vmem:[#allocation10 + $0x14c] sm:$0xf0]  ;;  %v1789_v28 = vor.u32 %v1980_v23, %v1788_v22  ;;  %v1389_v31 = vor.u32 %v1880_v24, %v1388_v17  ;;  %v1457_v0 = vor.u32 %v1894_v61, %v1454_v62  ;;  %v1994_v12 = vld [vmem:[#allocation10 + $0x3e4] sm:$0xf] }
  0x37   :  { %1087 = vmatpush.bf16.msra.mxu0 %v1421_v6  ;;  %1352 = vmatmul.msk.bf16.vlgmr.msrb.gmra.mxu2 %vm228_vm2, %v121_v14  ;;  %v1372_v29 = vld [vmem:[#allocation10 + $0x20] sm:$0xf]  ;;  %v1517_v32 = vor.u32 %v1912_v26, %v1516_v25  ;;  %v1944_v33 = vld [vmem:[#allocation10 + $0x24c] sm:$0xf0]  ;;  %v1854_v13 = vld [vmem:[#allocation10 + $0x3f0] sm:$0xf0] }
  0x38   :  { %1353 = vmatmul.msk.bf16.vlgmr.msrb.gmra.mxu3 %vm228_vm2, %v121_v14  ;;  %1113 = vmatpush.bf16.msra.mxu2 %v1677_v15  ;;  %v1644_v30 = vld [vmem:[#allocation10 + $0x240] sm:$0xf]  ;;  %v1976_v35 = vld [vmem:[#allocation10 + $0x34c] sm:$0xf0]  ;;  %v1857_v14 = vor.u32 %v1994_v12, %v1854_v13  ;;  %v1890_v15 = vld [vmem:[#allocation10 + $0xa4] sm:$0xf] }
  0x39   :  { %1100 = vmatpush.bf16.msra.mxu1 %v1549_v7  ;;  %1126 = vmatpush.bf16.msra.mxu3 %v1805_v16  ;;  %v1772_v34 = vld [vmem:[#allocation10 + $0x340] sm:$0xf]  ;;  %v1876_v36 = vld [vmem:[#allocation10 + $0x2c] sm:$0xf0]  ;;  %v1645_v39 = vor.u32 %v1944_v33, %v1644_v30  ;;  %v1438_v16 = vld [vmem:[#allocation10 + $0xb0] sm:$0xf0] }
  0x3a   :  { %v1500_v37 = vld [vmem:[#allocation10 + $0x120] sm:$0xf]  ;;  %v1908_v38 = vld [vmem:[#allocation10 + $0x12c] sm:$0xf0]  ;;  %v1773_v40 = vor.u32 %v1976_v35, %v1772_v34  ;;  %v1373_v41 = vor.u32 %v1876_v36, %v1372_v29  ;;  %v1922_v17 = vld [vmem:[#allocation10 + $0x1a4] sm:$0xf]  ;;  %v1441_v18 = vor.u32 %v1890_v15, %v1438_v16 }
  0x3b   :  { %1088 = vmatpush.bf16.msra.mxu0 %v1405_v19  ;;  %v1501_v42 = vor.u32 %v1908_v38, %v1500_v37  ;;  %v1356_v43 = vld [vmem:[#allocation10] sm:$0xf]  ;;  %v1872_v44 = vld [vmem:[#allocation10 + $0xc] sm:$0xf0]  ;;  %v1566_v19 = vld [vmem:[#allocation10 + $0x1b0] sm:$0xf0] }
  0x3c   :  { %1114 = vmatpush.bf16.msra.mxu2 %v1661_v27  ;;  %v1484_v45 = vld [vmem:[#allocation10 + $0x100] sm:$0xf]  ;;  %v1357_v46 = vor.u32 %v1872_v44, %v1356_v43  ;;  %v1904_v47 = vld [vmem:[#allocation10 + $0x10c] sm:$0xf0]  ;;  %v1710_v21 = vld [vmem:[#allocation10 + $0x2d0] sm:$0xf0]  ;;  %v1569_v22 = vor.u32 %v1922_v17, %v1566_v19 }
  0x3d   :  { %1101 = vmatpush.bf16.msra.mxu1 %v1533_v20  ;;  %1127 = vmatpush.bf16.msra.mxu3 %v1789_v28  ;;  %v1485_v50 = vor.u32 %v1904_v47, %v1484_v45  ;;  %v1628_v54 = vld [vmem:[#allocation10 + $0x220] sm:$0xf]  ;;  %v1940_v56 = vld [vmem:[#allocation10 + $0x22c] sm:$0xf0]  ;;  %v1958_v20 = vld [vmem:[#allocation10 + $0x2c4] sm:$0xf] }
  0x3e   :  { %v1756_v57 = vld [vmem:[#allocation10 + $0x320] sm:$0xf]  ;;  %v1972_v58 = vld [vmem:[#allocation10 + $0x32c] sm:$0xf0]  ;;  %v1629_v59 = vor.u32 %v1940_v56, %v1628_v54  ;;  %v1713_v23 = vor.u32 %v1958_v20, %v1710_v21  ;;  %v1990_v24 = vld [vmem:[#allocation10 + $0x3c4] sm:$0xf] }
  0x3f   :  { %1089 = vmatpush.bf16.msra.mxu0 %v1389_v31  ;;  %v1757_v60 = vor.u32 %v1972_v58, %v1756_v57  ;;  %v1612_v3 = vld [vmem:[#allocation10 + $0x200] sm:$0xf]  ;;  %v1936_v4 = vld [vmem:[#allocation10 + $0x20c] sm:$0xf0]  ;;  %v1838_v25 = vld [vmem:[#allocation10 + $0x3d0] sm:$0xf0] }
  0x40   :  { %1115 = vmatpush.bf16.msra.mxu2 %v1645_v39  ;;  %v1740_v5 = vld [vmem:[#allocation10 + $0x300] sm:$0xf]  ;;  %v1613_v6 = vor.u32 %v1936_v4, %v1612_v3  ;;  %v1968_v7 = vld [vmem:[#allocation10 + $0x30c] sm:$0xf0]  ;;  %v1886_v26 = vld [vmem:[#allocation10 + $0x84] sm:$0xf]  ;;  %v1841_v27 = vor.u32 %v1990_v24, %v1838_v25 }
  0x41   :  { %1102 = vmatpush.bf16.msra.mxu1 %v1517_v32  ;;  %1128 = vmatpush.bf16.msra.mxu3 %v1773_v40  ;;  %v1741_v10 = vor.u32 %v1968_v7, %v1740_v5  ;;  %v1422_v28 = vld [vmem:[#allocation10 + $0x90] sm:$0xf0]  ;;  %v1918_v29 = vld [vmem:[#allocation10 + $0x184] sm:$0xf] }
  0x42   :  { %v1550_v30 = vld [vmem:[#allocation10 + $0x190] sm:$0xf0]  ;;  %v1425_v31 = vor.u32 %v1886_v26, %v1422_v28  ;;  %v1954_v33 = vld [vmem:[#allocation10 + $0x2a4] sm:$0xf] }
  0x43   :  { %1090 = vmatpush.bf16.msra.mxu0 %v1373_v41  ;;  %v1553_v32 = vor.u32 %v1918_v29, %v1550_v30  ;;  %v1694_v34 = vld [vmem:[#allocation10 + $0x2b0] sm:$0xf0]  ;;  %v1986_v35 = vld [vmem:[#allocation10 + $0x3a4] sm:$0xf] }
  0x44   :  { %1116 = vmatpush.bf16.msra.mxu2 %v1629_v59  ;;  %v1697_v36 = vor.u32 %v1954_v33, %v1694_v34  ;;  %v1822_v37 = vld [vmem:[#allocation10 + $0x3b0] sm:$0xf0]  ;;  %v1882_v39 = vld [vmem:[#allocation10 + $0x64] sm:$0xf] }
  0x45   :  { %1103 = vmatpush.bf16.msra.mxu1 %v1501_v42  ;;  %1129 = vmatpush.bf16.msra.mxu3 %v1757_v60  ;;  %v1825_v38 = vor.u32 %v1986_v35, %v1822_v37  ;;  %v1406_v40 = vld [vmem:[#allocation10 + $0x70] sm:$0xf0]  ;;  %v1914_v41 = vld [vmem:[#allocation10 + $0x164] sm:$0xf] }
  0x46   :  { %v1409_v42 = vor.u32 %v1882_v39, %v1406_v40  ;;  %v1534_v43 = vld [vmem:[#allocation10 + $0x170] sm:$0xf0]  ;;  %v1950_v45 = vld [vmem:[#allocation10 + $0x284] sm:$0xf] }
  0x47   :  { %1091 = vmatpush.bf16.msra.mxu0 %v1357_v46  ;;  %v1537_v44 = vor.u32 %v1914_v41, %v1534_v43  ;;  %v1678_v46 = vld [vmem:[#allocation10 + $0x290] sm:$0xf0]  ;;  %v1982_v48 = vld [vmem:[#allocation10 + $0x384] sm:$0xf] }
  0x48   :  { %1117 = vmatpush.bf16.msra.mxu2 %v1613_v6  ;;  %v1681_v47 = vor.u32 %v1950_v45, %v1678_v46  ;;  %v1806_v49 = vld [vmem:[#allocation10 + $0x390] sm:$0xf0]  ;;  %v1910_v53 = vld [vmem:[#allocation10 + $0x144] sm:$0xf] }
  0x49   :  { %1104 = vmatpush.bf16.msra.mxu1 %v1485_v50  ;;  %1130 = vmatpush.bf16.msra.mxu3 %v1741_v10  ;;  %v1809_v50 = vor.u32 %v1982_v48, %v1806_v49  ;;  %v1390_v52 = vld [vmem:[#allocation10 + $0x50] sm:$0xf0]  ;;  %v1946_v57 = vld [vmem:[#allocation10 + $0x264] sm:$0xf] }
  0x4a   :  { %v1662_v58 = vld [vmem:[#allocation10 + $0x270] sm:$0xf0]  ;;  %v1978_v59 = vld [vmem:[#allocation10 + $0x364] sm:$0xf] }
  0x4b   :  { %1136 = vmatpush.bf16.msrb.mxu0 %v1473_v51  ;;  %v1878_v51 = vld [vmem:[#allocation10 + $0x44] sm:$0xf]  ;;  %v1665_v60 = vor.u32 %v1946_v57, %v1662_v58  ;;  %v1790_v61 = vld [vmem:[#allocation10 + $0x370] sm:$0xf0]  ;;  %v1933_v57 = vld [vmem:[#allocation10 + $0x1f4] sm:$0xf0] }
  0x4c   :  { %1162 = vmatpush.bf16.msrb.mxu2 %v1729_v11  ;;  %v1393_v54 = vor.u32 %v1878_v51, %v1390_v52  ;;  %v1793_v62 = vor.u32 %v1978_v59, %v1790_v61  ;;  %v1874_v63 = vld [vmem:[#allocation10 + $0x24] sm:$0xf]  ;;  %v1502_v3 = vld [vmem:[#allocation10 + $0x130] sm:$0xf0] }
  0x4d   :  { %1149 = vmatpush.bf16.msrb.mxu1 %v1601_v55  ;;  %1175 = vmatpush.bf16.msrb.mxu3 %v1857_v14  ;;  %v1518_v55 = vld [vmem:[#allocation10 + $0x150] sm:$0xf0]  ;;  %v1942_v5 = vld [vmem:[#allocation10 + $0x244] sm:$0xf] }
  0x4e   :  { %v1521_v56 = vor.u32 %v1910_v53, %v1518_v55  ;;  %v1646_v6 = vld [vmem:[#allocation10 + $0x250] sm:$0xf0]  ;;  %v1974_v7 = vld [vmem:[#allocation10 + $0x344] sm:$0xf]  ;;  %v1901_v55 = vld [vmem:[#allocation10 + $0xf4] sm:$0xf0] }
  0x4f   :  { %1137 = vmatpush.bf16.msrb.mxu0 %v1457_v0  ;;  %v1374_v0 = vld [vmem:[#allocation10 + $0x30] sm:$0xf0]  ;;  %v1649_v8 = vor.u32 %v1942_v5, %v1646_v6  ;;  %v1870_v11 = vld [vmem:[#allocation10 + $0x4] sm:$0xf]  ;;  %v1929_v5 = vld [vmem:[#allocation10 + $0x1d4] sm:$0xf0] }
  0x50   :  { %1163 = vmatpush.bf16.msrb.mxu2 %v1713_v23  ;;  %v1377_v1 = vor.u32 %v1874_v63, %v1374_v0  ;;  %v1774_v9 = vld [vmem:[#allocation10 + $0x350] sm:$0xf0]  ;;  %v1902_v13 = vld [vmem:[#allocation10 + $0x104] sm:$0xf] }
  0x51   :  { %1150 = vmatpush.bf16.msrb.mxu1 %v1585_v2  ;;  %1176 = vmatpush.bf16.msrb.mxu3 %v1841_v27  ;;  %v1906_v2 = vld [vmem:[#allocation10 + $0x124] sm:$0xf]  ;;  %v1777_v10 = vor.u32 %v1974_v7, %v1774_v9  ;;  %v1358_v12 = vld [vmem:[#allocation10 + $0x10] sm:$0xf0]  ;;  %v1732_v9 = vld [vmem:[#allocation10 + $0x2e8] sm:$0xf] }
  0x52   :  { %v1505_v4 = vor.u32 %v1906_v2, %v1502_v3  ;;  %v1361_v14 = vor.u32 %v1870_v11, %v1358_v12  ;;  %v1486_v15 = vld [vmem:[#allocation10 + $0x110] sm:$0xf0]  ;;  %v1938_v17 = vld [vmem:[#allocation10 + $0x224] sm:$0xf]  ;;  %v1897_v2 = vld [vmem:[#allocation10 + $0xd4] sm:$0xf0] }
  0x53   :  { %1138 = vmatpush.bf16.msrb.mxu0 %v1441_v18  ;;  %v1489_v16 = vor.u32 %v1902_v13, %v1486_v15  ;;  %v1630_v18 = vld [vmem:[#allocation10 + $0x230] sm:$0xf0]  ;;  %v1970_v19 = vld [vmem:[#allocation10 + $0x324] sm:$0xf]  ;;  %v1860_v11 = vld [vmem:[#allocation10 + $0x3e8] sm:$0xf] }
  0x54   :  { %1164 = vmatpush.bf16.msrb.mxu2 %v1697_v36  ;;  %v1758_v20 = vld [vmem:[#allocation10 + $0x330] sm:$0xf0]  ;;  %v1633_v23 = vor.u32 %v1938_v17, %v1630_v18  ;;  %v1934_v25 = vld [vmem:[#allocation10 + $0x204] sm:$0xf]  ;;  %v1997_v13 = vld [vmem:[#allocation10 + $0x3f4] sm:$0xf0] }
  0x55   :  { %1151 = vmatpush.bf16.msrb.mxu1 %v1569_v22  ;;  %1177 = vmatpush.bf16.msrb.mxu3 %v1825_v38  ;;  %v1761_v24 = vor.u32 %v1970_v19, %v1758_v20  ;;  %v1614_v26 = vld [vmem:[#allocation10 + $0x210] sm:$0xf0]  ;;  %v1966_v28 = vld [vmem:[#allocation10 + $0x304] sm:$0xf]  ;;  %v1893_v15 = vld [vmem:[#allocation10 + $0xb4] sm:$0xf0] }
  0x56   :  { %v1617_v27 = vor.u32 %v1934_v25, %v1614_v26  ;;  %v1742_v29 = vld [vmem:[#allocation10 + $0x310] sm:$0xf0]  ;;  %v284_v35 = vld [vmem:[%s2303_s4] sm:$0xf]  ;;  %v1925_v17 = vld [vmem:[#allocation10 + $0x1b4] sm:$0xf0] }
  0x57   :  { %1139 = vmatpush.bf16.msrb.mxu0 %v1425_v31  ;;  %v1745_v30 = vor.u32 %v1966_v28, %v1742_v29  ;;  %v286_v38 = vperm.slane %v284_v35, 0  ;;  %v287_v39 = vperm.slane %v284_v35, 1  ;;  %v288_v46 = vperm.slane %v284_v35, 2  ;;  %v1961_v25 = vld [vmem:[#allocation10 + $0x2d4] sm:$0xf0] }
  0x58   :  { %1165 = vmatpush.bf16.msrb.mxu2 %v1681_v47  ;;  %v289_v47 = vperm.slane %v284_v35, 3  ;;  %v1844_v26 = vld [vmem:[#allocation10 + $0x3c8] sm:$0xf]  ;;  %v1993_v29 = vld [vmem:[#allocation10 + $0x3d4] sm:$0xf0] }
  0x59   :  { %1152 = vmatpush.bf16.msrb.mxu1 %v1553_v32  ;;  %1178 = vmatpush.bf16.msrb.mxu3 %v1809_v50  ;;  %v1845_v35 = vor.u32 %v1993_v29, %v1844_v26  ;;  %v1941_v29 = vld [vmem:[#allocation10 + $0x234] sm:$0xf0] }
  0x5b   :  { %1140 = vmatpush.bf16.msrb.mxu0 %v1409_v42 }
  0x5c   :  { %1166 = vmatpush.bf16.msrb.mxu2 %v1665_v60 }
  0x5d   :  { %1153 = vmatpush.bf16.msrb.mxu1 %v1537_v44  ;;  %1179 = vmatpush.bf16.msrb.mxu3 %v1793_v62 }
  0x5f   :  { %1141 = vmatpush.bf16.msrb.mxu0 %v1393_v54  ;;  %v1476_v54 = vld [vmem:[#allocation10 + $0xe8] sm:$0xf] }
  0x60   :  { %1167 = vmatpush.bf16.msrb.mxu2 %v1649_v8  ;;  %v1477_v61 = vor.u32 %v1901_v55, %v1476_v54  ;;  %v1396_v54 = vld [vmem:[#allocation10 + $0x48] sm:$0xf]  ;;  %v1881_v55 = vld [vmem:[#allocation10 + $0x54] sm:$0xf0] }
  0x61   :  { %1154 = vmatpush.bf16.msrb.mxu1 %v1521_v56  ;;  %1180 = vmatpush.bf16.msrb.mxu3 %v1777_v10  ;;  %v1604_v56 = vld [vmem:[#allocation10 + $0x1e8] sm:$0xf]  ;;  %v1965_v10 = vld [vmem:[#allocation10 + $0x2f4] sm:$0xf0] }
  0x62   :  { %v1605_v0 = vor.u32 %v1933_v57, %v1604_v56  ;;  %v1733_v19 = vor.u32 %v1965_v10, %v1732_v9  ;;  %v1524_v56 = vld [vmem:[#allocation10 + $0x148] sm:$0xf]  ;;  %v1913_v57 = vld [vmem:[#allocation10 + $0x154] sm:$0xf0] }
  0x63   :  { %1142 = vmatpush.bf16.msrb.mxu0 %v1377_v1  ;;  %v1460_v1 = vld [vmem:[#allocation10 + $0xc8] sm:$0xf] }
  0x64   :  { %1168 = vmatpush.bf16.msrb.mxu2 %v1633_v23  ;;  %v1461_v8 = vor.u32 %v1897_v2, %v1460_v1  ;;  %v1796_v1 = vld [vmem:[#allocation10 + $0x368] sm:$0xf]  ;;  %v1981_v2 = vld [vmem:[#allocation10 + $0x374] sm:$0xf0] }
  0x65   :  { %1155 = vmatpush.bf16.msrb.mxu1 %v1505_v4  ;;  %1181 = vmatpush.bf16.msrb.mxu3 %v1761_v24  ;;  %v1588_v4 = vld [vmem:[#allocation10 + $0x1c8] sm:$0xf]  ;;  %v1797_v9 = vor.u32 %v1981_v2, %v1796_v1  ;;  %v1991_v1 = vld [vmem:[#allocation10 + $0x3cc] sm:$0xf]  ;;  %v1846_v2 = vld [vmem:[#allocation10 + $0x3d8] sm:$0xf0] }
  0x66   :  { %v1589_v12 = vor.u32 %v1929_v5, %v1588_v4  ;;  %v1716_v24 = vld [vmem:[#allocation10 + $0x2c8] sm:$0xf]  ;;  %v1877_v5 = vld [vmem:[#allocation10 + $0x34] sm:$0xf0] }
  0x67   :  { %1143 = vmatpush.bf16.msrb.mxu0 %v1361_v14  ;;  %v1444_v14 = vld [vmem:[#allocation10 + $0xa8] sm:$0xf] }
  0x68   :  { %1169 = vmatpush.bf16.msrb.mxu2 %v1617_v27  ;;  %v1445_v23 = vor.u32 %v1893_v15, %v1444_v14  ;;  %v1380_v4 = vld [vmem:[#allocation10 + $0x28] sm:$0xf]  ;;  %v1977_v15 = vld [vmem:[#allocation10 + $0x354] sm:$0xf0] }
  0x69   :  { %1156 = vmatpush.bf16.msrb.mxu1 %v1489_v16  ;;  %1182 = vmatpush.bf16.msrb.mxu3 %v1745_v30  ;;  %v1572_v16 = vld [vmem:[#allocation10 + $0x1a8] sm:$0xf] }
  0x6a   :  { %v1573_v28 = vor.u32 %v1925_v17, %v1572_v16  ;;  %v1428_v30 = vld [vmem:[#allocation10 + $0x88] sm:$0xf]  ;;  %v1873_v17 = vld [vmem:[#allocation10 + $0x14] sm:$0xf0] }
  0x6b   :  { %v1652_v10 = vld [vmem:[#allocation10 + $0x248] sm:$0xf] }
  0x6c   :  { %v1364_v16 = vld [vmem:[#allocation10 + $0x8] sm:$0xf] }
  0xa3   :  { %v165_v21 = vpop.f32.mrf.mxu0  ;;  %v178_v22 = vpop.f32.mrf.mxu1 }
  0xaa   :  { %v191_v31 = vpop.f32.mrf.mxu2 }
  0xab   :  { %v204_v32 = vpop.f32.mrf.mxu3  ;;  %v167_v33 = vpop.f32.mrf.mxu0 }
  0xac   :  { %v180_v34 = vpop.f32.mrf.mxu1  ;;  %v1921_v33 = vld [vmem:[#allocation10 + $0x194] sm:$0xf0] }
  0xad   :  { %v1717_v34 = vor.u32 %v1961_v25, %v1716_v24  ;;  %v1931_v24 = vld [vmem:[#allocation10 + $0x1ec] sm:$0xf]  ;;  %v1606_v25 = vld [vmem:[#allocation10 + $0x1f8] sm:$0xf0] }
  0xb2   :  { %v193_v36 = vpop.f32.mrf.mxu2 }
  0xb3   :  { %v206_v37 = vpop.f32.mrf.mxu3  ;;  %v241_v40 = vpop.f32.mrf.mxu0 }
  0xb4   :  { %v254_v41 = vpop.f32.mrf.mxu1  ;;  %v242_v42 = vadd.f32 %v241_v40, %v165_v21  ;;  %v1700_v37 = vld [vmem:[#allocation10 + $0x2a8] sm:$0xf] }
  0xb5   :  { %v255_v43 = vadd.f32 %v254_v41, %v178_v22  ;;  %v1861_v22 = vor.u32 %v1997_v13, %v1860_v11  ;;  %v1828_v40 = vld [vmem:[#allocation10 + $0x3a8] sm:$0xf]  ;;  %v1989_v41 = vld [vmem:[#allocation10 + $0x3b4] sm:$0xf0]  ;;  %v1381_v13 = vor.u32 %v1877_v5, %v1380_v4  ;;  %v1887_v4 = vld [vmem:[#allocation10 + $0x8c] sm:$0xf] }
  0xb6   :  { %v294_v44 = vadd.f32 %v286_v38, %v242_v42  ;;  %v1957_v38 = vld [vmem:[#allocation10 + $0x2b4] sm:$0xf0]  ;;  %v1412_v42 = vld [vmem:[#allocation10 + $0x68] sm:$0xf]  ;;  %v1430_v5 = vld [vmem:[#allocation10 + $0x98] sm:$0xf0] }
  0xb7   :  { %v295_v45 = vadd.f32 %v287_v39, %v255_v43  ;;  %v1885_v43 = vld [vmem:[#allocation10 + $0x74] sm:$0xf0] }
  0xb8   :  { %2007 = vtanh.f32 %v294_v44  ;;  %v1540_v44 = vld [vmem:[#allocation10 + $0x168] sm:$0xf]  ;;  %v1945_v11 = vld [vmem:[#allocation10 + $0x254] sm:$0xf0] }
  0xb9   :  { %2009 = vtanh.f32 %v295_v45  ;;  %v1917_v45 = vld [vmem:[#allocation10 + $0x174] sm:$0xf0] }
  0xba   :  { %v267_v48 = vpop.f32.mrf.mxu2 }
  0xbb   :  { %v280_v49 = vpop.f32.mrf.mxu3  ;;  %v268_v50 = vadd.f32 %v267_v48, %v191_v31  ;;  %v243_v52 = vpop.f32.mrf.mxu0  ;;  %v1889_v31 = vld [vmem:[#allocation10 + $0x94] sm:$0xf0]  ;;  %v1684_v48 = vld [vmem:[#allocation10 + $0x288] sm:$0xf] }
  0xbc   :  { %v281_v51 = vadd.f32 %v280_v49, %v204_v32  ;;  %v256_v53 = vpop.f32.mrf.mxu1  ;;  %v1556_v32 = vld [vmem:[#allocation10 + $0x188] sm:$0xf]  ;;  %v1429_v36 = vor.u32 %v1889_v31, %v1428_v30  ;;  %v1953_v49 = vld [vmem:[#allocation10 + $0x294] sm:$0xf0]  ;;  %v1365_v30 = vor.u32 %v1873_v17, %v1364_v16  ;;  %v1883_v16 = vld [vmem:[#allocation10 + $0x6c] sm:$0xf] }
  0xbd   :  { %v296_v58 = vadd.f32 %v288_v46, %v268_v50  ;;  %v1557_v39 = vor.u32 %v1921_v33, %v1556_v32  ;;  %v1701_v46 = vor.u32 %v1957_v38, %v1700_v37  ;;  %v1413_v50 = vor.u32 %v1885_v43, %v1412_v42  ;;  %v1812_v52 = vld [vmem:[#allocation10 + $0x388] sm:$0xf]  ;;  %v1985_v53 = vld [vmem:[#allocation10 + $0x394] sm:$0xf0]  ;;  %v1462_v38 = vld [vmem:[#allocation10 + $0xd8] sm:$0xf0] }
  0xbe   :  { %v297_v59 = vadd.f32 %v289_v47, %v281_v51  ;;  %v2008_v60 = vpop.eup %2007  ;;  %v1829_v47 = vor.u32 %v1989_v41, %v1828_v40  ;;  %v1541_v51 = vor.u32 %v1917_v45, %v1540_v44  ;;  %v1764_v32 = vld [vmem:[#allocation10 + $0x328] sm:$0xf]  ;;  %v1973_v33 = vld [vmem:[#allocation10 + $0x334] sm:$0xf0]  ;;  %v1590_v40 = vld [vmem:[#allocation10 + $0x1d8] sm:$0xf0] }
  0xbf   :  { %v2010_v62 = vpop.eup %2009  ;;  %v2269_v63 = vpack.c.bf16 %v2008_v60, %v2008_v60  ;;  %2011 = vtanh.f32 %v296_v58  ;;  %v1685_v58 = vor.u32 %v1953_v49, %v1684_v48  ;;  %v1668_v60 = vld [vmem:[#allocation10 + $0x268] sm:$0xf]  ;;  %v1765_v41 = vor.u32 %v1973_v33, %v1764_v32  ;;  %v1937_v43 = vld [vmem:[#allocation10 + $0x214] sm:$0xf0]  ;;  %v1414_v17 = vld [vmem:[#allocation10 + $0x78] sm:$0xf0] }
  0xc0   :  { %v2271_v3 = vpack.c.bf16 %v2010_v62, %v2010_v62  ;;  %2013 = vtanh.f32 %v297_v59  ;;  %v1813_v59 = vor.u32 %v1985_v53, %v1812_v52  ;;  %v1397_v62 = vor.u32 %v1881_v55, %v1396_v54  ;;  %v1620_v42 = vld [vmem:[#allocation10 + $0x208] sm:$0xf]  ;;  %v1969_v45 = vld [vmem:[#allocation10 + $0x314] sm:$0xf0]  ;;  %v1891_v52 = vld [vmem:[#allocation10 + $0xac] sm:$0xf] }
  0xc1   :  { %1092 = vmatmul.bf16.vlgmr.msra.gmra.mxu0 %v2269_v63  ;;  %v1748_v44 = vld [vmem:[#allocation10 + $0x308] sm:$0xf]  ;;  %v1621_v53 = vor.u32 %v1937_v43, %v1620_v42  ;;  %v1446_v54 = vld [vmem:[#allocation10 + $0xb8] sm:$0xf0]  ;;  %v1923_v55 = vld [vmem:[#allocation10 + $0x1ac] sm:$0xf] }
  0xc2   :  { %v269_v6 = vpop.f32.mrf.mxu2  ;;  %1105 = vmatmul.bf16.vlgmr.msra.gmra.mxu1 %v2271_v3  ;;  %1188 = vmatpush.bf16.msra.mxu0 %v1477_v61  ;;  %v1949_v61 = vld [vmem:[#allocation10 + $0x274] sm:$0xf0]  ;;  %v1911_v32 = vld [vmem:[#allocation10 + $0x14c] sm:$0xf]  ;;  %v1526_v33 = vld [vmem:[#allocation10 + $0x158] sm:$0xf0] }
  0xc3   :  { %v282_v7 = vpop.f32.mrf.mxu3  ;;  %1201 = vmatpush.bf16.msra.mxu1 %v1605_v0  ;;  %v1525_v0 = vor.u32 %v1913_v57, %v1524_v56  ;;  %v1508_v6 = vld [vmem:[#allocation10 + $0x128] sm:$0xf]  ;;  %v1574_v56 = vld [vmem:[#allocation10 + $0x1b8] sm:$0xf0]  ;;  %v1749_v57 = vor.u32 %v1969_v45, %v1748_v44  ;;  %v1875_v42 = vld [vmem:[#allocation10 + $0x2c] sm:$0xf] }
  0xc4   :  { %v1909_v7 = vld [vmem:[#allocation10 + $0x134] sm:$0xf0]  ;;  %v1382_v43 = vld [vmem:[#allocation10 + $0x38] sm:$0xf0]  ;;  %v1907_v44 = vld [vmem:[#allocation10 + $0x12c] sm:$0xf] }
  0xc5   :  { %v2012_v18 = vpop.eup %2011  ;;  %v1509_v14 = vor.u32 %v1909_v7, %v1508_v6  ;;  %v1919_v6 = vld [vmem:[#allocation10 + $0x18c] sm:$0xf]  ;;  %v1558_v7 = vld [vmem:[#allocation10 + $0x198] sm:$0xf0] }
  0xc6   :  { %v2014_v20 = vpop.eup %2013  ;;  %v2275_v21 = vpack.c.bf16 %v2012_v18, %v2012_v18  ;;  %1189 = vmatpush.bf16.msra.mxu0 %v1461_v8  ;;  %v1669_v8 = vor.u32 %v1949_v61, %v1668_v60  ;;  %v1492_v18 = vld [vmem:[#allocation10 + $0x108] sm:$0xf]  ;;  %v1959_v60 = vld [vmem:[#allocation10 + $0x2cc] sm:$0xf]  ;;  %v1718_v61 = vld [vmem:[#allocation10 + $0x2d8] sm:$0xf0] }
  0xc7   :  { %v2277_v27 = vpack.c.bf16 %v2014_v20, %v2014_v20  ;;  %1202 = vmatpush.bf16.msra.mxu1 %v1589_v12  ;;  %v1780_v12 = vld [vmem:[#allocation10 + $0x348] sm:$0xf]  ;;  %v1899_v20 = vld [vmem:[#allocation10 + $0xec] sm:$0xf]  ;;  %v1510_v45 = vld [vmem:[#allocation10 + $0x138] sm:$0xf0] }
  0xc8   :  { %1118 = vmatmul.bf16.vlgmr.msra.gmra.mxu2 %v2275_v21  ;;  %v1781_v26 = vor.u32 %v1977_v15, %v1780_v12  ;;  %v1433_v12 = vor.u32 %v1887_v4, %v1430_v5  ;;  %v1830_v15 = vld [vmem:[#allocation10 + $0x3b8] sm:$0xf0] }
  0xc9   :  { %1131 = vmatmul.bf16.vlgmr.msra.gmra.mxu3 %v2277_v27  ;;  %1214 = vmatpush.bf16.msra.mxu2 %v1733_v19  ;;  %v1905_v19 = vld [vmem:[#allocation10 + $0x114] sm:$0xf0] }
  0xca   :  { %1227 = vmatpush.bf16.msra.mxu3 %v1861_v22  ;;  %1190 = vmatpush.bf16.msra.mxu0 %v1445_v23  ;;  %v1653_v22 = vor.u32 %v1945_v11, %v1652_v10  ;;  %v1478_v23 = vld [vmem:[#allocation10 + $0xf8] sm:$0xf0]  ;;  %v1493_v31 = vor.u32 %v1905_v19, %v1492_v18  ;;  %v1955_v10 = vld [vmem:[#allocation10 + $0x2ac] sm:$0xf] }
  0xcb   :  { %1203 = vmatpush.bf16.msra.mxu1 %v1573_v28  ;;  %v1636_v28 = vld [vmem:[#allocation10 + $0x228] sm:$0xf]  ;;  %v1702_v11 = vld [vmem:[#allocation10 + $0x2b8] sm:$0xf0]  ;;  %v1915_v18 = vld [vmem:[#allocation10 + $0x16c] sm:$0xf] }
  0xcc   :  { %v1637_v37 = vor.u32 %v1941_v29, %v1636_v28  ;;  %v1542_v19 = vld [vmem:[#allocation10 + $0x178] sm:$0xf0]  ;;  %v1983_v28 = vld [vmem:[#allocation10 + $0x38c] sm:$0xf] }
  0xcd   :  { %1215 = vmatpush.bf16.msra.mxu2 %v1717_v34  ;;  %v1481_v34 = vor.u32 %v1899_v20, %v1478_v23  ;;  %v1705_v20 = vor.u32 %v1955_v10, %v1702_v11  ;;  %v1951_v23 = vld [vmem:[#allocation10 + $0x28c] sm:$0xf]  ;;  %v1814_v29 = vld [vmem:[#allocation10 + $0x398] sm:$0xf0] }
  0xce   :  { %1228 = vmatpush.bf16.msra.mxu3 %v1845_v35  ;;  %1191 = vmatpush.bf16.msra.mxu0 %v1429_v36  ;;  %v1609_v35 = vor.u32 %v1931_v24, %v1606_v25  ;;  %v1895_v36 = vld [vmem:[#allocation10 + $0xcc] sm:$0xf]  ;;  %v1686_v24 = vld [vmem:[#allocation10 + $0x298] sm:$0xf0]  ;;  %v1417_v25 = vor.u32 %v1883_v16, %v1414_v17 }
  0xcf   :  { %1204 = vmatpush.bf16.msra.mxu1 %v1557_v39  ;;  %v1927_v39 = vld [vmem:[#allocation10 + $0x1cc] sm:$0xf]  ;;  %v1465_v48 = vor.u32 %v1895_v36, %v1462_v38 }
  0xd0   :  { %v1593_v49 = vor.u32 %v1927_v39, %v1590_v40  ;;  %v1947_v36 = vld [vmem:[#allocation10 + $0x26c] sm:$0xf]  ;;  %v1529_v39 = vor.u32 %v1911_v32, %v1526_v33 }
  0xd1   :  { %1216 = vmatpush.bf16.msra.mxu2 %v1701_v46  ;;  %1144 = vmatmul.bf16.vlgmr.msrb.gmra.mxu0 %v2269_v63  ;;  %v1963_v46 = vld [vmem:[#allocation10 + $0x2ec] sm:$0xf] }
  0xd2   :  { %1229 = vmatpush.bf16.msra.mxu3 %v1829_v47  ;;  %1157 = vmatmul.bf16.vlgmr.msrb.gmra.mxu1 %v2271_v3  ;;  %v1734_v47 = vld [vmem:[#allocation10 + $0x2f8] sm:$0xf0]  ;;  %v1979_v40 = vld [vmem:[#allocation10 + $0x36c] sm:$0xf] }
  0xd3   :  { %1192 = vmatpush.bf16.msra.mxu0 %v1413_v50  ;;  %1205 = vmatpush.bf16.msra.mxu1 %v1541_v51  ;;  %v1995_v50 = vld [vmem:[#allocation10 + $0x3ec] sm:$0xf]  ;;  %v1862_v51 = vld [vmem:[#allocation10 + $0x3f8] sm:$0xf0] }
  0xd5   :  { %1217 = vmatpush.bf16.msra.mxu2 %v1685_v58  ;;  %v1737_v58 = vor.u32 %v1963_v46, %v1734_v47 }
  0xd6   :  { %1230 = vmatpush.bf16.msra.mxu3 %v1813_v59  ;;  %v1865_v59 = vor.u32 %v1995_v50, %v1862_v51  ;;  %v1385_v50 = vor.u32 %v1875_v42, %v1382_v43  ;;  %v1513_v51 = vor.u32 %v1907_v44, %v1510_v45 }
  0xd7   :  { %1193 = vmatpush.bf16.msra.mxu0 %v1397_v62  ;;  %1206 = vmatpush.bf16.msra.mxu1 %v1525_v0  ;;  %v1449_v62 = vor.u32 %v1891_v52, %v1446_v54  ;;  %v1577_v0 = vor.u32 %v1923_v55, %v1574_v56  ;;  %v1975_v52 = vld [vmem:[#allocation10 + $0x34c] sm:$0xf]  ;;  %v1366_v55 = vld [vmem:[#allocation10 + $0x18] sm:$0xf0] }
  0xd8   :  { %1170 = vmatmul.bf16.vlgmr.msrb.gmra.mxu2 %v2275_v21  ;;  %v1871_v54 = vld [vmem:[#allocation10 + $0xc] sm:$0xf] }
  0xd9   :  { %1183 = vmatmul.bf16.vlgmr.msrb.gmra.mxu3 %v2277_v27  ;;  %1218 = vmatpush.bf16.msra.mxu2 %v1669_v8  ;;  %v1721_v8 = vor.u32 %v1959_v60, %v1718_v61  ;;  %v1903_v56 = vld [vmem:[#allocation10 + $0x10c] sm:$0xf]  ;;  %v1638_v61 = vld [vmem:[#allocation10 + $0x238] sm:$0xf0] }
  0xda   :  { %1231 = vmatpush.bf16.msra.mxu3 %v1797_v9  ;;  %v1849_v9 = vor.u32 %v1991_v1, %v1846_v2  ;;  %v1939_v60 = vld [vmem:[#allocation10 + $0x22c] sm:$0xf]  ;;  %v1766_v2 = vld [vmem:[#allocation10 + $0x338] sm:$0xf0] }
  0xdb   :  { %1194 = vmatpush.bf16.msra.mxu0 %v1381_v13  ;;  %1207 = vmatpush.bf16.msra.mxu1 %v1509_v14  ;;  %v1561_v13 = vor.u32 %v1919_v6, %v1558_v7  ;;  %v1987_v14 = vld [vmem:[#allocation10 + $0x3ac] sm:$0xf]  ;;  %v1641_v4 = vor.u32 %v1939_v60, %v1638_v61  ;;  %v1622_v7 = vld [vmem:[#allocation10 + $0x218] sm:$0xf0]  ;;  %v1296_v60 = vld [vmem:[%s2306_s7] sm:$0xf] }
  0xdc   :  { %v1971_v1 = vld [vmem:[#allocation10 + $0x32c] sm:$0xf]  ;;  %v1299_v61 = vperm.slane %v1296_v60, 1 }
  0xdd   :  { %1219 = vmatpush.bf16.msra.mxu2 %v1653_v22  ;;  %v1833_v22 = vor.u32 %v1987_v14, %v1830_v15  ;;  %v1769_v5 = vor.u32 %v1971_v1, %v1766_v2  ;;  %v1935_v6 = vld [vmem:[#allocation10 + $0x20c] sm:$0xf]  ;;  %v1298_v2 = vperm.slane %v1296_v60, 0 }
  0xde   :  { %1232 = vmatpush.bf16.msra.mxu3 %v1781_v26  ;;  %v1545_v26 = vor.u32 %v1915_v18, %v1542_v19  ;;  %v1625_v10 = vor.u32 %v1935_v6, %v1622_v7 }
  0xdf   :  { %1195 = vmatpush.bf16.msra.mxu0 %v1365_v30  ;;  %1208 = vmatpush.bf16.msra.mxu1 %v1493_v31  ;;  %v1879_v30 = vld [vmem:[#allocation10 + $0x4c] sm:$0xf]  ;;  %v1398_v31 = vld [vmem:[#allocation10 + $0x58] sm:$0xf0] }
  0xe0   :  { %v1401_v38 = vor.u32 %v1879_v30, %v1398_v31 }
  0xe1   :  { %1220 = vmatpush.bf16.msra.mxu2 %v1637_v37  ;;  %v1670_v37 = vld [vmem:[#allocation10 + $0x278] sm:$0xf0] }
  0xe2   :  { %1233 = vmatpush.bf16.msra.mxu3 %v1765_v41  ;;  %1196 = vmatmul.bf16.vlgmr.msra.gmra.mxu0 %v2269_v63  ;;  %v1798_v41 = vld [vmem:[#allocation10 + $0x378] sm:$0xf0]  ;;  %v1673_v46 = vor.u32 %v1947_v36, %v1670_v37 }
  0xe3   :  { %1240 = vmatpush.bf16.msrb.mxu0 %v1481_v34  ;;  %1253 = vmatpush.bf16.msrb.mxu1 %v1609_v35  ;;  %v1689_v34 = vor.u32 %v1951_v23, %v1686_v24  ;;  %v1817_v35 = vor.u32 %v1983_v28, %v1814_v29  ;;  %v1801_v47 = vor.u32 %v1979_v40, %v1798_v41 }
  0xe4   :  { %1209 = vmatmul.bf16.vlgmr.msra.gmra.mxu1 %v2271_v3 }
  0xe5   :  { %1221 = vmatpush.bf16.msra.mxu2 %v1621_v53  ;;  %v1782_v53 = vld [vmem:[#allocation10 + $0x358] sm:$0xf0] }
  0xe6   :  { %1234 = vmatpush.bf16.msra.mxu3 %v1749_v57  ;;  %v1494_v57 = vld [vmem:[#allocation10 + $0x118] sm:$0xf0] }
  0xe7   :  { %1241 = vmatpush.bf16.msrb.mxu0 %v1465_v48  ;;  %1254 = vmatpush.bf16.msrb.mxu1 %v1593_v49  ;;  %v1943_v48 = vld [vmem:[#allocation10 + $0x24c] sm:$0xf]  ;;  %v1654_v49 = vld [vmem:[#allocation10 + $0x258] sm:$0xf0] }
  0xe8   :  { %1222 = vmatmul.bf16.vlgmr.msra.gmra.mxu2 %v2275_v21 }
  0xe9   :  { %1266 = vmatpush.bf16.msrb.mxu2 %v1737_v58  ;;  %1235 = vmatmul.bf16.vlgmr.msra.gmra.mxu3 %v2277_v27  ;;  %v1657_v58 = vor.u32 %v1943_v48, %v1654_v49 }
  0xea   :  { %1279 = vmatpush.bf16.msrb.mxu3 %v1865_v59  ;;  %v1785_v59 = vor.u32 %v1975_v52, %v1782_v53 }
  0xeb   :  { %1242 = vmatpush.bf16.msrb.mxu0 %v1449_v62  ;;  %1255 = vmatpush.bf16.msrb.mxu1 %v1577_v0  ;;  %v1369_v62 = vor.u32 %v1871_v54, %v1366_v55  ;;  %v1497_v0 = vor.u32 %v1903_v56, %v1494_v57 }
  0xed   :  { %1267 = vmatpush.bf16.msrb.mxu2 %v1721_v8  ;;  %v1967_v8 = vld [vmem:[#allocation10 + $0x30c] sm:$0xf] }
  0xee   :  { %1280 = vmatpush.bf16.msrb.mxu3 %v1849_v9  ;;  %v1750_v9 = vld [vmem:[#allocation10 + $0x318] sm:$0xf0] }
  0xef   :  { %1243 = vmatpush.bf16.msrb.mxu0 %v1433_v12  ;;  %1256 = vmatpush.bf16.msrb.mxu1 %v1561_v13  ;;  %v1753_v11 = vor.u32 %v1967_v8, %v1750_v9  ;;  %v434_v12 = vld [vmem:[#allocation11] sm:$0xf]  ;;  %v1301_v8 = vperm.slane %v1296_v60, 3 }
  0xf0   :  { %v436_v13 = vperm.slane %v434_v12, 0  ;;  %v437_v36 = vperm.slane %v434_v12, 1  ;;  %v439_v49 = vperm.slane %v434_v12, 3 }
  0xf1   :  { %1268 = vmatpush.bf16.msrb.mxu2 %v1705_v20 }
  0xf2   :  { %1281 = vmatpush.bf16.msrb.mxu3 %v1833_v22 }
  0xf3   :  { %1244 = vmatpush.bf16.msrb.mxu0 %v1417_v25  ;;  %1257 = vmatpush.bf16.msrb.mxu1 %v1545_v26 }
  0xf5   :  { %1269 = vmatpush.bf16.msrb.mxu2 %v1689_v34 }
  0xf6   :  { %1282 = vmatpush.bf16.msrb.mxu3 %v1817_v35 }
  0xf7   :  { %1245 = vmatpush.bf16.msrb.mxu0 %v1401_v38  ;;  %1258 = vmatpush.bf16.msrb.mxu1 %v1529_v39  ;;  %v438_v39 = vperm.slane %v434_v12, 2 }
  0xf9   :  { %1270 = vmatpush.bf16.msrb.mxu2 %v1673_v46 }
  0xfa   :  { %1283 = vmatpush.bf16.msrb.mxu3 %v1801_v47 }
  0xfb   :  { %1246 = vmatpush.bf16.msrb.mxu0 %v1385_v50  ;;  %1259 = vmatpush.bf16.msrb.mxu1 %v1513_v51 }
  0xfd   :  { %1271 = vmatpush.bf16.msrb.mxu2 %v1657_v58 }
  0xfe   :  { %1284 = vmatpush.bf16.msrb.mxu3 %v1785_v59 }
  0xff   :  { %1247 = vmatpush.bf16.msrb.mxu0 %v1369_v62  ;;  %1260 = vmatpush.bf16.msrb.mxu1 %v1497_v0 }
 0x101   :  { %1272 = vmatpush.bf16.msrb.mxu2 %v1641_v4  ;;  %v1300_v4 = vperm.slane %v1296_v60, 2 }
 0x102   :  { %1285 = vmatpush.bf16.msrb.mxu3 %v1769_v5  ;;  %1248 = vmatmul.bf16.vlgmr.msrb.gmra.mxu0 %v2269_v63 }
 0x103   :  { %1261 = vmatmul.bf16.vlgmr.msrb.gmra.mxu1 %v2271_v3 }
 0x105   :  { %1273 = vmatpush.bf16.msrb.mxu2 %v1625_v10 }
 0x106   :  { %1286 = vmatpush.bf16.msrb.mxu3 %v1753_v11 }
 0x108   :  { %1274 = vmatmul.bf16.vlgmr.msrb.gmra.mxu2 %v2275_v21 }
 0x109   :  { %1287 = vmatmul.bf16.vlgmr.msrb.gmra.mxu3 %v2277_v27 }
 0x13e   :  { %v1093_v14 = vpop.f32.mrf.mxu0 }
 0x13f   :  { %v1094_v15 = vadd.f32 %v1093_v14, %v436_v13  ;;  %v1106_v16 = vpop.f32.mrf.mxu1 }
 0x141   :  { %v1107_v17 = vadd.f32 %v1106_v16, %v1094_v15 }
 0x146   :  { %v1095_v18 = vpop.f32.mrf.mxu0 }
 0x147   :  { %v1108_v19 = vpop.f32.mrf.mxu1 }
 0x14b   :  { %v1119_v20 = vpop.f32.mrf.mxu2 }
 0x14c   :  { %v1132_v22 = vpop.f32.mrf.mxu3  ;;  %v1120_v47 = vadd.f32 %v1119_v20, %v1107_v17  ;;  %v2006_v17 = vld [vmem:[#allocation2] ss:$0 sm:$0xff] }
 0x14e   :  { %v1145_v63 = vpop.f32.mrf.mxu0  ;;  %v1133_v51 = vadd.f32 %v1132_v22, %v1120_v47 }
 0x14f   :  { %v1158_v23 = vpop.f32.mrf.mxu1  ;;  %v1146_v40 = vadd.f32 %v1145_v63, %v437_v36 }
 0x151   :  { %v1159_v42 = vadd.f32 %v1158_v23, %v1146_v40 }
 0x153   :  { %v1121_v24 = vpop.f32.mrf.mxu2 }
 0x154   :  { %v1134_v3 = vpop.f32.mrf.mxu3 }
 0x156   :  { %v1147_v25 = vpop.f32.mrf.mxu0 }
 0x157   :  { %v1160_v26 = vpop.f32.mrf.mxu1 }
 0x15b   :  { %v1171_v28 = vpop.f32.mrf.mxu2 }
 0x15c   :  { %v1184_v21 = vpop.f32.mrf.mxu3  ;;  %v1172_v44 = vadd.f32 %v1171_v28, %v1159_v42 }
 0x15e   :  { %v1185_v50 = vadd.f32 %v1184_v21, %v1172_v44 }
 0x15f   :  { %v1197_v29 = vpop.f32.mrf.mxu0 }
 0x160   :  { %v1198_v41 = vadd.f32 %v1197_v29, %v438_v39  ;;  %2015 = vtanh.f32 %v1185_v50 }
 0x161   :  { %v1210_v27 = vpop.f32.mrf.mxu1  ;;  %2017 = vtanh.f32 %v1133_v51 }
 0x162   :  { %v1211_v45 = vadd.f32 %v1210_v27, %v1198_v41 }
 0x163   :  { %v1173_v30 = vpop.f32.mrf.mxu2 }
 0x164   :  { %v1186_v31 = vpop.f32.mrf.mxu3 }
 0x166   :  { %v2016_v62 = vpop.eup %2015 }
 0x167   :  { %v1199_v32 = vpop.f32.mrf.mxu0  ;;  %v2018_v1 = vpop.eup %2017  ;;  %v1307_v6 = vmul.f32 %v2016_v62, %v1299_v61 }
 0x168   :  { %v1306_v9 = vmul.f32 %v2018_v1, %v1298_v2 }
 0x169   :  { %v1212_v33 = vpop.f32.mrf.mxu1 }
 0x16a   :  { %v1310_v12 = vadd.f32 %v1307_v6, %v1306_v9 }
 0x16b   :  { %v1223_v34 = vpop.f32.mrf.mxu2 }
 0x16c   :  { %v1236_v35 = vpop.f32.mrf.mxu3  ;;  %v1224_v48 = vadd.f32 %v1223_v34, %v1211_v45 }
 0x16e   :  { %v1237_v52 = vadd.f32 %v1236_v35, %v1224_v48 }
 0x170   :  { %2019 = vtanh.f32 %v1237_v52 }
 0x173   :  { %v1225_v37 = vpop.f32.mrf.mxu2 }
 0x174   :  { %v1238_v38 = vpop.f32.mrf.mxu3 }
 0x176   :  { %v2020_v5 = vpop.eup %2019 }
 0x177   :  { %v1308_v10 = vmul.f32 %v2020_v5, %v1300_v4 }
 0x179   :  { %v1311_v15 = vadd.f32 %v1310_v12, %v1308_v10 }
 0x17f   :  { %v1249_v43 = vpop.f32.mrf.mxu0 }
 0x180   :  { %v1262_v46 = vpop.f32.mrf.mxu1  ;;  %v1250_v53 = vadd.f32 %v1249_v43, %v439_v49 }
 0x182   :  { %v1263_v56 = vadd.f32 %v1262_v46, %v1250_v53 }
 0x187   :  { %v1251_v54 = vpop.f32.mrf.mxu0 }
 0x188   :  { %v1264_v55 = vpop.f32.mrf.mxu1 }
 0x18b   :  { %v1275_v57 = vpop.f32.mrf.mxu2 }
 0x18c   :  { %v1276_v58 = vadd.f32 %v1275_v57, %v1263_v56  ;;  %v1288_v59 = vpop.f32.mrf.mxu3 }
 0x18e   :  { %v1289_v0 = vadd.f32 %v1288_v59, %v1276_v58 }
 0x190   :  { %2021 = vtanh.f32 %v1289_v0 }
 0x193   :  { %v1277_v7 = vpop.f32.mrf.mxu2 }
 0x194   :  { %v1290_v11 = vpop.f32.mrf.mxu3 }
 0x196   :  { %v2022_v13 = vpop.eup %2021 }
 0x197   :  { %v1309_v14 = vmul.f32 %v2022_v13, %v1301_v8 }
 0x199   :  { %v1312_v16 = vadd.f32 %v1311_v15, %v1309_v14 }
 0x19b   :  { %1313 = vadd.xlane.f32.xlu0 %v1312_v16 }
 0x20e   :  { %v1314_v18 = vpop.xlane.xlu0 %1313 }
 0x20f   :  { %v1319_v19 = vadd.f32 %v2006_v17, %v1314_v18 }
 0x211   :  { %1321 = vst.msk [vmem:[%s2308_s9] sm:$0xff] %vm1320_vm3, %v1319_v19 }
 0x212   :  { %1326 = vsyncpa [#allocation4], 1 }
 0x213   :  { %1327 = vsyncpa [#allocation6], 1 }
 0x214   :  { %1328 = vsyncpa [#allocation9], 1 }
 0x215   :  { %1329 = vsyncpa [#allocation12], 1 }

</bundles_post_ra>
